<compile_context>
chip_gen: v6e
topology: v6e:2x2x1
jax: 0.10.0
libtpu: 0.0.40
codegen_flags: <defaults>
</compile_context>

<pallas_src>
import functools

import jax
import jax.numpy as jnp
from jax import lax
from jax.experimental import pallas as pl
from jax.experimental.pallas import tpu as pltpu

KERNEL_SIZE = 3
STRIDE = 2
PADDING = 1


def _avg2max_kernel(x_ref, o_ref, *, ho, wo, hq, wq, H, W):
    """Processes TB (N*C) slices per grid step.

    x_ref: (TB, 4, hq, wq) zero-padded parity planes, plane p = (row_parity*2 + col_parity)
           holding padded-image coords (2r + row_parity, 2q + col_parity).
    o_ref: (TB, ho, wo)    avg_pool - 2*max_pool
    """
    xf = x_ref[...].astype(jnp.float32)          # (TB, 4, hq, wq)
    tb = xf.shape[0]
    neg_inf = jnp.float32(-jnp.inf)

    # Reconstruct the -inf padding for the max path with an in-kernel border mask
    # (valid padded coords are rows/cols in [PADDING, PADDING + H/W)).
    masked = []
    for p in range(4):
        rp, cp = p // 2, p % 2
        r = lax.broadcasted_iota(jnp.int32, (hq, wq), 0) * 2 + rp
        c = lax.broadcasted_iota(jnp.int32, (hq, wq), 1) * 2 + cp
        valid = ((r >= PADDING) & (r < PADDING + H)
                 & (c >= PADDING) & (c < PADDING + W))
        masked.append(jnp.where(valid[None, :, :], xf[:, p], neg_inf))

    s = jnp.zeros((tb, ho, wo), jnp.float32)
    m = jnp.full((tb, ho, wo), neg_inf, jnp.float32)
    # 3x3 window, stride 2: window offset (dy, dx) lives on parity plane
    # p = (dy%2)*2 + dx%2 at rows [dy//2, dy//2+ho), cols [dx//2, dx//2+wo).
    for dy in range(KERNEL_SIZE):
        for dx in range(KERNEL_SIZE):
            p = (dy % 2) * 2 + (dx % 2)
            r0, c0 = dy // 2, dx // 2
            s = s + xf[:, p, r0:r0 + ho, c0:c0 + wo]
            m = jnp.maximum(m, masked[p][:, r0:r0 + ho, c0:c0 + wo])

    # PyTorch AvgPool2d default count_include_pad=True -> divide by 9 always.
    avg = s * (1.0 / (KERNEL_SIZE * KERNEL_SIZE))
    o_ref[...] = (avg - 2.0 * m).astype(o_ref.dtype)


def _build_parity_planes(xb, hq, wq):
    """(B, H, W) -> (B, 4, hq, wq): zero-padded stride-2 parity planes.

    Built directly via 4 strided slices + pads (no full padded intermediate,
    no transpose), so x is read once on the host/XLA side.
    """
    planes = []
    for rp in (0, 1):
        for cp in (0, 1):
            sl = xb[:, (1 - rp)::2, (1 - cp)::2]
            pre_r, pre_c = 1 - rp, 1 - cp
            post_r = hq - pre_r - sl.shape[1]
            post_c = wq - pre_c - sl.shape[2]
            planes.append(jnp.pad(sl, ((0, 0), (pre_r, post_r), (pre_c, post_c))))
    return jnp.stack(planes, axis=1)  # plane index = rp*2 + cp


def avg2max_pooling(x):
    """x: (N, C, H, W) float -> (N, C, Ho, Wo) = avg_pool(x) - 2*max_pool(x)."""
    assert STRIDE == 2 and KERNEL_SIZE == 3 and PADDING == 1
    assert jnp.issubdtype(x.dtype, jnp.floating), \
        "Avg2MaxPooling kernel requires a floating dtype (-inf masking for max path)"
    N, C, H, W = x.shape
    ho = (H + 2 * PADDING - KERNEL_SIZE) // STRIDE + 1
    wo = (W + 2 * PADDING - KERNEL_SIZE) // STRIDE + 1
    hq, wq = ho + 1, wo + 1
    B = N * C
    xb = x.reshape(B, H, W)

    planes = _build_parity_planes(xb, hq, wq)  # (B, 4, hq, wq)

    # Size TB against a conservative VMEM working-set budget:
    #   ~4x(in_block + out_block) covers double-buffered I/O + in-kernel temporaries.
    # 24 MiB target keeps double-buffering alive even on v7x (64 MiB physical VMEM).
    itemsize = jnp.dtype(x.dtype).itemsize
    per_slice_bytes = (4 * hq * wq + ho * wo) * itemsize
    vmem_budget = 24 * 1024 * 1024
    tb_cap = max(1, vmem_budget // (4 * per_slice_bytes))
    if B >= 4:
        tb_cap = min(tb_cap, B // 4)  # keep grid >= 4 steps: v7x 2 TCs + pipeline overlap
    tb_cap = min(tb_cap, B)
    tb = 1
    for t in range(tb_cap, 0, -1):
        if B % t == 0:
            tb = t
            break

    kern = functools.partial(_avg2max_kernel, ho=ho, wo=wo, hq=hq, wq=wq, H=H, W=W)
    out = pl.pallas_call(
        kern,
        out_shape=jax.ShapeDtypeStruct((B, ho, wo), x.dtype),
        grid=(B // tb,),
        in_specs=[pl.BlockSpec((tb, 4, hq, wq), lambda b: (b, 0, 0, 0))],
        out_specs=pl.BlockSpec((tb, ho, wo), lambda b: (b, 0, 0)),
        compiler_params=pltpu.CompilerParams(
            dimension_semantics=("parallel",),
            vmem_limit_bytes=48 * 1024 * 1024,
        ),
    )(planes)
    return out.reshape(N, C, ho, wo)


if __name__ == "__main__":
    key = jax.random.PRNGKey(0)
    x = jax.random.normal(key, (2, 4, 16, 16), dtype=jnp.float32)

    out = jax.block_until_ready(avg2max_pooling(x))

    # Pure-JAX reference (matches PyTorch AvgPool2d(count_include_pad=True) and MaxPool2d).
    avg_ref = lax.reduce_window(
        x, 0.0, lax.add, (1, 1, 3, 3), (1, 1, 2, 2),
        [(0, 0), (0, 0), (1, 1), (1, 1)]) / 9.0
    max_ref = lax.reduce_window(
        x, -jnp.inf, lax.max, (1, 1, 3, 3), (1, 1, 2, 2),
        [(0, 0), (0, 0), (1, 1), (1, 1)])
    ref = avg_ref - 2.0 * max_ref

    assert out.shape == (2, 4, 8, 8), out.shape
    assert jnp.allclose(out, ref, atol=1e-5), "Pallas result mismatch vs reference"
    print("KERNEL_OK")
</pallas_src>

<mosaic_0001>
module attributes {stable_mosaic.version = 11 : i64} {
  func.func @_avg2max_kernel(%arg0: i32, %arg1: memref<2x4x9x9xf32, #tpu.memory_space<vmem>>, %arg2: memref<2x8x8xf32, #tpu.memory_space<vmem>>) attributes {dimension_semantics = [#tpu.dimension_semantics<parallel>], iteration_bounds = array<i64: 4>, scalar_prefetch = 0 : i64, scratch_operands = 0 : i64, tpu.core_type = #tpu.core_type<tc>, window_params = [{transform_indices = @transform_0, window_bounds = array<i64: 2, 4, 9, 9>}, {transform_indices = @transform_1, window_bounds = array<i64: 2, 8, 8>}]} {
    %c0 = arith.constant 0 : index
    %c0_0 = arith.constant 0 : index
    %c0_1 = arith.constant 0 : index
    %c0_2 = arith.constant 0 : index
    %0 = vector.load %arg1[%c0, %c0_0, %c0_1, %c0_2] : memref<2x4x9x9xf32, #tpu.memory_space<vmem>>, vector<2x4x9x9xf32>
    %1 = tpu.iota {dimensions = array<i32: 0>} : vector<9x9xi32>
    %c2_i32 = arith.constant 2 : i32
    %2 = vector.broadcast %c2_i32 : i32 to vector<9x9xi32>
    %3 = arith.muli %1, %2 : vector<9x9xi32>
    %c0_i32 = arith.constant 0 : i32
    %4 = vector.broadcast %c0_i32 : i32 to vector<9x9xi32>
    %5 = arith.addi %3, %4 : vector<9x9xi32>
    %6 = tpu.iota {dimensions = array<i32: 1>} : vector<9x9xi32>
    %c2_i32_3 = arith.constant 2 : i32
    %7 = vector.broadcast %c2_i32_3 : i32 to vector<9x9xi32>
    %8 = arith.muli %6, %7 : vector<9x9xi32>
    %c0_i32_4 = arith.constant 0 : i32
    %9 = vector.broadcast %c0_i32_4 : i32 to vector<9x9xi32>
    %10 = arith.addi %8, %9 : vector<9x9xi32>
    %c1_i32 = arith.constant 1 : i32
    %11 = vector.broadcast %c1_i32 : i32 to vector<9x9xi32>
    %12 = arith.cmpi sge, %5, %11 : vector<9x9xi32>
    %c17_i32 = arith.constant 17 : i32
    %13 = vector.broadcast %c17_i32 : i32 to vector<9x9xi32>
    %14 = arith.cmpi slt, %5, %13 : vector<9x9xi32>
    %15 = arith.andi %12, %14 : vector<9x9xi1>
    %c1_i32_5 = arith.constant 1 : i32
    %16 = vector.broadcast %c1_i32_5 : i32 to vector<9x9xi32>
    %17 = arith.cmpi sge, %10, %16 : vector<9x9xi32>
    %18 = arith.andi %15, %17 : vector<9x9xi1>
    %c17_i32_6 = arith.constant 17 : i32
    %19 = vector.broadcast %c17_i32_6 : i32 to vector<9x9xi32>
    %20 = arith.cmpi slt, %10, %19 : vector<9x9xi32>
    %21 = arith.andi %18, %20 : vector<9x9xi1>
    %22 = vector.shape_cast %21 : vector<9x9xi1> to vector<1x9x9xi1>
    %23 = vector.extract_strided_slice %0 {offsets = [0, 0, 0, 0], sizes = [2, 1, 9, 9], strides = [1, 1, 1, 1]} : vector<2x4x9x9xf32> to vector<2x1x9x9xf32>
    %24 = vector.shape_cast %23 : vector<2x1x9x9xf32> to vector<2x9x9xf32>
    %cst = arith.constant 0xFF800000 : f32
    %25 = vector.shape_cast %22 : vector<1x9x9xi1> to vector<1x9x9xi1>
    %26 = vector.broadcast %25 : vector<1x9x9xi1> to vector<2x9x9xi1>
    %27 = vector.broadcast %cst : f32 to vector<2x9x9xf32>
    %28 = arith.select %26, %24, %27 : vector<2x9x9xi1>, vector<2x9x9xf32>
    %29 = tpu.iota {dimensions = array<i32: 0>} : vector<9x9xi32>
    %c2_i32_7 = arith.constant 2 : i32
    %30 = vector.broadcast %c2_i32_7 : i32 to vector<9x9xi32>
    %31 = arith.muli %29, %30 : vector<9x9xi32>
    %c0_i32_8 = arith.constant 0 : i32
    %32 = vector.broadcast %c0_i32_8 : i32 to vector<9x9xi32>
    %33 = arith.addi %31, %32 : vector<9x9xi32>
    %34 = tpu.iota {dimensions = array<i32: 1>} : vector<9x9xi32>
    %c2_i32_9 = arith.constant 2 : i32
    %35 = vector.broadcast %c2_i32_9 : i32 to vector<9x9xi32>
    %36 = arith.muli %34, %35 : vector<9x9xi32>
    %c1_i32_10 = arith.constant 1 : i32
    %37 = vector.broadcast %c1_i32_10 : i32 to vector<9x9xi32>
    %38 = arith.addi %36, %37 : vector<9x9xi32>
    %c1_i32_11 = arith.constant 1 : i32
    %39 = vector.broadcast %c1_i32_11 : i32 to vector<9x9xi32>
    %40 = arith.cmpi sge, %33, %39 : vector<9x9xi32>
    %c17_i32_12 = arith.constant 17 : i32
    %41 = vector.broadcast %c17_i32_12 : i32 to vector<9x9xi32>
    %42 = arith.cmpi slt, %33, %41 : vector<9x9xi32>
    %43 = arith.andi %40, %42 : vector<9x9xi1>
    %c1_i32_13 = arith.constant 1 : i32
    %44 = vector.broadcast %c1_i32_13 : i32 to vector<9x9xi32>
    %45 = arith.cmpi sge, %38, %44 : vector<9x9xi32>
    %46 = arith.andi %43, %45 : vector<9x9xi1>
    %c17_i32_14 = arith.constant 17 : i32
    %47 = vector.broadcast %c17_i32_14 : i32 to vector<9x9xi32>
    %48 = arith.cmpi slt, %38, %47 : vector<9x9xi32>
    %49 = arith.andi %46, %48 : vector<9x9xi1>
    %50 = vector.shape_cast %49 : vector<9x9xi1> to vector<1x9x9xi1>
    %51 = vector.extract_strided_slice %0 {offsets = [0, 1, 0, 0], sizes = [2, 1, 9, 9], strides = [1, 1, 1, 1]} : vector<2x4x9x9xf32> to vector<2x1x9x9xf32>
    %52 = vector.shape_cast %51 : vector<2x1x9x9xf32> to vector<2x9x9xf32>
    %cst_15 = arith.constant 0xFF800000 : f32
    %53 = vector.shape_cast %50 : vector<1x9x9xi1> to vector<1x9x9xi1>
    %54 = vector.broadcast %53 : vector<1x9x9xi1> to vector<2x9x9xi1>
    %55 = vector.broadcast %cst_15 : f32 to vector<2x9x9xf32>
    %56 = arith.select %54, %52, %55 : vector<2x9x9xi1>, vector<2x9x9xf32>
    %57 = tpu.iota {dimensions = array<i32: 0>} : vector<9x9xi32>
    %c2_i32_16 = arith.constant 2 : i32
    %58 = vector.broadcast %c2_i32_16 : i32 to vector<9x9xi32>
    %59 = arith.muli %57, %58 : vector<9x9xi32>
    %c1_i32_17 = arith.constant 1 : i32
    %60 = vector.broadcast %c1_i32_17 : i32 to vector<9x9xi32>
    %61 = arith.addi %59, %60 : vector<9x9xi32>
    %62 = tpu.iota {dimensions = array<i32: 1>} : vector<9x9xi32>
    %c2_i32_18 = arith.constant 2 : i32
    %63 = vector.broadcast %c2_i32_18 : i32 to vector<9x9xi32>
    %64 = arith.muli %62, %63 : vector<9x9xi32>
    %c0_i32_19 = arith.constant 0 : i32
    %65 = vector.broadcast %c0_i32_19 : i32 to vector<9x9xi32>
    %66 = arith.addi %64, %65 : vector<9x9xi32>
    %c1_i32_20 = arith.constant 1 : i32
    %67 = vector.broadcast %c1_i32_20 : i32 to vector<9x9xi32>
    %68 = arith.cmpi sge, %61, %67 : vector<9x9xi32>
    %c17_i32_21 = arith.constant 17 : i32
    %69 = vector.broadcast %c17_i32_21 : i32 to vector<9x9xi32>
    %70 = arith.cmpi slt, %61, %69 : vector<9x9xi32>
    %71 = arith.andi %68, %70 : vector<9x9xi1>
    %c1_i32_22 = arith.constant 1 : i32
    %72 = vector.broadcast %c1_i32_22 : i32 to vector<9x9xi32>
    %73 = arith.cmpi sge, %66, %72 : vector<9x9xi32>
    %74 = arith.andi %71, %73 : vector<9x9xi1>
    %c17_i32_23 = arith.constant 17 : i32
    %75 = vector.broadcast %c17_i32_23 : i32 to vector<9x9xi32>
    %76 = arith.cmpi slt, %66, %75 : vector<9x9xi32>
    %77 = arith.andi %74, %76 : vector<9x9xi1>
    %78 = vector.shape_cast %77 : vector<9x9xi1> to vector<1x9x9xi1>
    %79 = vector.extract_strided_slice %0 {offsets = [0, 2, 0, 0], sizes = [2, 1, 9, 9], strides = [1, 1, 1, 1]} : vector<2x4x9x9xf32> to vector<2x1x9x9xf32>
    %80 = vector.shape_cast %79 : vector<2x1x9x9xf32> to vector<2x9x9xf32>
    %cst_24 = arith.constant 0xFF800000 : f32
    %81 = vector.shape_cast %78 : vector<1x9x9xi1> to vector<1x9x9xi1>
    %82 = vector.broadcast %81 : vector<1x9x9xi1> to vector<2x9x9xi1>
    %83 = vector.broadcast %cst_24 : f32 to vector<2x9x9xf32>
    %84 = arith.select %82, %80, %83 : vector<2x9x9xi1>, vector<2x9x9xf32>
    %85 = tpu.iota {dimensions = array<i32: 0>} : vector<9x9xi32>
    %c2_i32_25 = arith.constant 2 : i32
    %86 = vector.broadcast %c2_i32_25 : i32 to vector<9x9xi32>
    %87 = arith.muli %85, %86 : vector<9x9xi32>
    %c1_i32_26 = arith.constant 1 : i32
    %88 = vector.broadcast %c1_i32_26 : i32 to vector<9x9xi32>
    %89 = arith.addi %87, %88 : vector<9x9xi32>
    %90 = tpu.iota {dimensions = array<i32: 1>} : vector<9x9xi32>
    %c2_i32_27 = arith.constant 2 : i32
    %91 = vector.broadcast %c2_i32_27 : i32 to vector<9x9xi32>
    %92 = arith.muli %90, %91 : vector<9x9xi32>
    %c1_i32_28 = arith.constant 1 : i32
    %93 = vector.broadcast %c1_i32_28 : i32 to vector<9x9xi32>
    %94 = arith.addi %92, %93 : vector<9x9xi32>
    %c1_i32_29 = arith.constant 1 : i32
    %95 = vector.broadcast %c1_i32_29 : i32 to vector<9x9xi32>
    %96 = arith.cmpi sge, %89, %95 : vector<9x9xi32>
    %c17_i32_30 = arith.constant 17 : i32
    %97 = vector.broadcast %c17_i32_30 : i32 to vector<9x9xi32>
    %98 = arith.cmpi slt, %89, %97 : vector<9x9xi32>
    %99 = arith.andi %96, %98 : vector<9x9xi1>
    %c1_i32_31 = arith.constant 1 : i32
    %100 = vector.broadcast %c1_i32_31 : i32 to vector<9x9xi32>
    %101 = arith.cmpi sge, %94, %100 : vector<9x9xi32>
    %102 = arith.andi %99, %101 : vector<9x9xi1>
    %c17_i32_32 = arith.constant 17 : i32
    %103 = vector.broadcast %c17_i32_32 : i32 to vector<9x9xi32>
    %104 = arith.cmpi slt, %94, %103 : vector<9x9xi32>
    %105 = arith.andi %102, %104 : vector<9x9xi1>
    %106 = vector.shape_cast %105 : vector<9x9xi1> to vector<1x9x9xi1>
    %107 = vector.extract_strided_slice %0 {offsets = [0, 3, 0, 0], sizes = [2, 1, 9, 9], strides = [1, 1, 1, 1]} : vector<2x4x9x9xf32> to vector<2x1x9x9xf32>
    %108 = vector.shape_cast %107 : vector<2x1x9x9xf32> to vector<2x9x9xf32>
    %cst_33 = arith.constant 0xFF800000 : f32
    %109 = vector.shape_cast %106 : vector<1x9x9xi1> to vector<1x9x9xi1>
    %110 = vector.broadcast %109 : vector<1x9x9xi1> to vector<2x9x9xi1>
    %111 = vector.broadcast %cst_33 : f32 to vector<2x9x9xf32>
    %112 = arith.select %110, %108, %111 : vector<2x9x9xi1>, vector<2x9x9xf32>
    %cst_34 = arith.constant 0.000000e+00 : f32
    %113 = vector.broadcast %cst_34 : f32 to vector<2x8x8xf32>
    %cst_35 = arith.constant 0xFF800000 : f32
    %114 = vector.broadcast %cst_35 : f32 to vector<2x8x8xf32>
    %115 = vector.extract_strided_slice %0 {offsets = [0, 0, 0, 0], sizes = [2, 1, 8, 8], strides = [1, 1, 1, 1]} : vector<2x4x9x9xf32> to vector<2x1x8x8xf32>
    %116 = vector.shape_cast %115 : vector<2x1x8x8xf32> to vector<2x8x8xf32>
    %117 = arith.addf %113, %116 : vector<2x8x8xf32>
    %118 = vector.extract_strided_slice %28 {offsets = [0, 0, 0], sizes = [2, 8, 8], strides = [1, 1, 1]} : vector<2x9x9xf32> to vector<2x8x8xf32>
    %119 = arith.maximumf %114, %118 : vector<2x8x8xf32>
    %120 = vector.extract_strided_slice %0 {offsets = [0, 1, 0, 0], sizes = [2, 1, 8, 8], strides = [1, 1, 1, 1]} : vector<2x4x9x9xf32> to vector<2x1x8x8xf32>
    %121 = vector.shape_cast %120 : vector<2x1x8x8xf32> to vector<2x8x8xf32>
    %122 = arith.addf %117, %121 : vector<2x8x8xf32>
    %123 = vector.extract_strided_slice %56 {offsets = [0, 0, 0], sizes = [2, 8, 8], strides = [1, 1, 1]} : vector<2x9x9xf32> to vector<2x8x8xf32>
    %124 = arith.maximumf %119, %123 : vector<2x8x8xf32>
    %125 = vector.extract_strided_slice %0 {offsets = [0, 0, 0, 1], sizes = [2, 1, 8, 8], strides = [1, 1, 1, 1]} : vector<2x4x9x9xf32> to vector<2x1x8x8xf32>
    %126 = vector.shape_cast %125 : vector<2x1x8x8xf32> to vector<2x8x8xf32>
    %127 = arith.addf %122, %126 : vector<2x8x8xf32>
    %128 = vector.extract_strided_slice %28 {offsets = [0, 0, 1], sizes = [2, 8, 8], strides = [1, 1, 1]} : vector<2x9x9xf32> to vector<2x8x8xf32>
    %129 = arith.maximumf %124, %128 : vector<2x8x8xf32>
    %130 = vector.extract_strided_slice %0 {offsets = [0, 2, 0, 0], sizes = [2, 1, 8, 8], strides = [1, 1, 1, 1]} : vector<2x4x9x9xf32> to vector<2x1x8x8xf32>
    %131 = vector.shape_cast %130 : vector<2x1x8x8xf32> to vector<2x8x8xf32>
    %132 = arith.addf %127, %131 : vector<2x8x8xf32>
    %133 = vector.extract_strided_slice %84 {offsets = [0, 0, 0], sizes = [2, 8, 8], strides = [1, 1, 1]} : vector<2x9x9xf32> to vector<2x8x8xf32>
    %134 = arith.maximumf %129, %133 : vector<2x8x8xf32>
    %135 = vector.extract_strided_slice %0 {offsets = [0, 3, 0, 0], sizes = [2, 1, 8, 8], strides = [1, 1, 1, 1]} : vector<2x4x9x9xf32> to vector<2x1x8x8xf32>
    %136 = vector.shape_cast %135 : vector<2x1x8x8xf32> to vector<2x8x8xf32>
    %137 = arith.addf %132, %136 : vector<2x8x8xf32>
    %138 = vector.extract_strided_slice %112 {offsets = [0, 0, 0], sizes = [2, 8, 8], strides = [1, 1, 1]} : vector<2x9x9xf32> to vector<2x8x8xf32>
    %139 = arith.maximumf %134, %138 : vector<2x8x8xf32>
    %140 = vector.extract_strided_slice %0 {offsets = [0, 2, 0, 1], sizes = [2, 1, 8, 8], strides = [1, 1, 1, 1]} : vector<2x4x9x9xf32> to vector<2x1x8x8xf32>
    %141 = vector.shape_cast %140 : vector<2x1x8x8xf32> to vector<2x8x8xf32>
    %142 = arith.addf %137, %141 : vector<2x8x8xf32>
    %143 = vector.extract_strided_slice %84 {offsets = [0, 0, 1], sizes = [2, 8, 8], strides = [1, 1, 1]} : vector<2x9x9xf32> to vector<2x8x8xf32>
    %144 = arith.maximumf %139, %143 : vector<2x8x8xf32>
    %145 = vector.extract_strided_slice %0 {offsets = [0, 0, 1, 0], sizes = [2, 1, 8, 8], strides = [1, 1, 1, 1]} : vector<2x4x9x9xf32> to vector<2x1x8x8xf32>
    %146 = vector.shape_cast %145 : vector<2x1x8x8xf32> to vector<2x8x8xf32>
    %147 = arith.addf %142, %146 : vector<2x8x8xf32>
    %148 = vector.extract_strided_slice %28 {offsets = [0, 1, 0], sizes = [2, 8, 8], strides = [1, 1, 1]} : vector<2x9x9xf32> to vector<2x8x8xf32>
    %149 = arith.maximumf %144, %148 : vector<2x8x8xf32>
    %150 = vector.extract_strided_slice %0 {offsets = [0, 1, 1, 0], sizes = [2, 1, 8, 8], strides = [1, 1, 1, 1]} : vector<2x4x9x9xf32> to vector<2x1x8x8xf32>
    %151 = vector.shape_cast %150 : vector<2x1x8x8xf32> to vector<2x8x8xf32>
    %152 = arith.addf %147, %151 : vector<2x8x8xf32>
    %153 = vector.extract_strided_slice %56 {offsets = [0, 1, 0], sizes = [2, 8, 8], strides = [1, 1, 1]} : vector<2x9x9xf32> to vector<2x8x8xf32>
    %154 = arith.maximumf %149, %153 : vector<2x8x8xf32>
    %155 = vector.extract_strided_slice %0 {offsets = [0, 0, 1, 1], sizes = [2, 1, 8, 8], strides = [1, 1, 1, 1]} : vector<2x4x9x9xf32> to vector<2x1x8x8xf32>
    %156 = vector.shape_cast %155 : vector<2x1x8x8xf32> to vector<2x8x8xf32>
    %157 = arith.addf %152, %156 : vector<2x8x8xf32>
    %158 = vector.extract_strided_slice %28 {offsets = [0, 1, 1], sizes = [2, 8, 8], strides = [1, 1, 1]} : vector<2x9x9xf32> to vector<2x8x8xf32>
    %159 = arith.maximumf %154, %158 : vector<2x8x8xf32>
    %cst_36 = arith.constant 0.111111112 : f32
    %160 = vector.broadcast %cst_36 : f32 to vector<2x8x8xf32>
    %161 = arith.mulf %157, %160 : vector<2x8x8xf32>
    %cst_37 = arith.constant 2.000000e+00 : f32
    %162 = vector.broadcast %cst_37 : f32 to vector<2x8x8xf32>
    %163 = arith.mulf %162, %159 : vector<2x8x8xf32>
    %164 = arith.subf %161, %163 : vector<2x8x8xf32>
    %c0_38 = arith.constant 0 : index
    %c0_39 = arith.constant 0 : index
    %c0_40 = arith.constant 0 : index
    %165 = vector.load %arg2[%c0_38, %c0_39, %c0_40] : memref<2x8x8xf32, #tpu.memory_space<vmem>>, vector<2x8x8xf32>
    tpu.vector_store %arg2[%c0_38, %c0_39, %c0_40], %164 {strides = array<i32>} : memref<2x8x8xf32, #tpu.memory_space<vmem>>, vector<2x8x8xf32>,
    return
  }
  func.func @transform_0(%arg0: i32) -> (i32, i32, i32, i32) {
    %c0_i32 = arith.constant 0 : i32
    %c0_i32_0 = arith.constant 0 : i32
    %c0_i32_1 = arith.constant 0 : i32
    %c0_i32_2 = arith.constant 0 : i32
    return %arg0, %c0_i32, %c0_i32_0, %c0_i32_1 : i32, i32, i32, i32
  }
  func.func @transform_1(%arg0: i32) -> (i32, i32, i32) {
    %c0_i32 = arith.constant 0 : i32
    %c0_i32_0 = arith.constant 0 : i32
    %c0_i32_1 = arith.constant 0 : i32
    return %arg0, %c0_i32, %c0_i32_0 : i32, i32, i32
  }
}

</mosaic_0001>

<bundles_post_ra>
// kernel: tpu_custom_call.1
= control target key start
LH: loop header
LB: loop body
LE: loop exit
PB: predicated region body
PF: predicated region fallthrough
CT: control target
= control target key end

     0   :  { %6 = vsyncpa [#allocation3], 0  ;;  %s787_s0 = inlined_call_operand.vmem [shape: f32[8,4,9,9], index: 0, kind: input, shape index: {}]   ;;  %s788_s1 = inlined_call_operand.hbm [shape: f32[8,8,8], index: 1, kind: output, shape index: {}]  }
   0x1   :  { %8 = vsyncpa [#allocation3 + $0x1], 0  ;;  %s533_s6 = smov 0   ;;  %s535_s7 = smov 0  }
   0x2   :  { %s537_s8 = smov 0   ;;  %s539_s9 = smov 0  }
   0x3 LB: > { %s554_s10 = sadd.s32 4294967295, %s517_s9   ;;  %s400_s11 = sadd.s32 4294967294, %s517_s9   ;;  %s517_s9 = sphi %s539_s9, %s810_s9   ;;  %s513_s8 = sphi %s537_s8, %s809_s8   ;;  %s509_s7 = sphi %s535_s7, %s808_s7   ;;  %s505_s6 = sphi %s533_s6, %s807_s6  }
   0x4   : > { %s558_s12 = sadd.s32 1, %s517_s9   ;;  %s47_s13 = sadd.s32 1, %s513_s8 }
   0x5   : > { %s44_s14 = ssub.s32 %s517_s9, %s558_s12  ;;  %p57_p0 = scmp.ne.s32.totalorder %s513_s8, %s509_s7 }
   0x6   : > { %p45_p1 = scmp.eq.s32.totalorder %s44_s14, 0  ;;  %p58_p2 = scmp.eq.s32.totalorder %s554_s10, 3 }
   0x7   : > { %p63_p3 = scmp.ne.s32.totalorder %s509_s7, %s505_s6  ;;  %p64_p4 = scmp.eq.s32.totalorder %s400_s11, 3 }
   0x8   : > { %s569_s15 = scalar_select %p45_p1, %s513_s8, %s47_s13  }
   0x9   : > { %p571_p5 = por %p58_p2, %p57_p0  ;;  %p575_p6 = por %p64_p4, %p63_p3 }
   0xa   : > { %p403_p7 = scmp.ge.s32.totalorder %s517_s9, 1  ;;  %p92_p8 = scmp.lt.s32.totalorder %s517_s9, 5 }
   0xc   : > { %p93_p9 = pnand %p403_p7, %p92_p8 }
   0xd   : > { %s405_s18 = sshll.u32 (!%p93_p9), %s554_s10, 1  ;;  %s519_s23 = smov (!%p93_p9), 127  }
   0xe   : > { %96 = sbr.rel (%p93_p9) target bundleno = 183 (0xb7), region = 24  ;;  %p114_p10 = scmp.lt.s32.totalorder (!%p93_p9), %s405_s18, 7 }
   0xf   : > { %s110_s24 = sand.u32 (!%p93_p9), 1, %s509_s7   ;;  %s414_s26 = sshll.u32 (!%p93_p9), %s554_s10, 8 }
  0x10   : > { %s404_s25 = sshll.u32 (!%p93_p9), %s110_s24, 4  ;;  %s741_s2 = scalar_lea.hbm (!%p93_p9), %s788_s1, %s414_s26 }
  0x11   : > { %s112_s27 = scalar_lea.vmem (!%p93_p9), [#allocation2], %s404_s25  ;;  %s747_s3 = scalar_lea.sflag (!%p93_p9), [#allocation3], %s110_s24 }
  0x12   : > { %s338_s28 = sshll.u32 (!%p93_p9), %s112_s27, 4  ;;  %s520_s5 = smov (!%p93_p9), [#allocation2]   ;;  %s743_s28 = int_to_ptr.vmem [resolvable:$true] %s338_s28 }
  0x13   : > { %v133_v0 = vlaneseq  ;;  %s812_s18 = smov (!%p114_p10, %s405_s18), 7  ;;  %vm248_vm14 = vcmask 1046528   ;;  %s457_s4 = scalar_lea.vmem %s743_s28, 256 }
  0x14   : > { %s413_s19 = sshll.u32 %s812_s18, 6  ;;  %p458_p11 = scmp.ne.s32.totalorder %s743_s28, %s457_s4 }
  0x15   : > { %v134_v1 = vshrl.u32 %v133_v0, 7  ;;  %v139_v2 = vand.u32 127, %v133_v0  ;;  %s585_s22 = scalar_lea.vmem %s787_s0, %s413_s19  ;;  %s461_s10 = sshll.u32 %s520_s5, 4  ;;  %s462_s10 = int_to_ptr.vmem [resolvable:$false] %s461_s10 }
  0x16   : > { %v588_v7 = vld [vmem:[%s585_s22 + $0x60] sm:$0xff]  ;;  %v123_v14 = vld [vmem:[%s585_s22 + $0x10] sm:$0xff]  ;;  %v122_v17 = vld [vmem:[%s585_s22 + $0x8] sm:$0x1]  ;;  %p459_p12 = pnand %p458_p11, %p571_p5  ;;  %s463_s11 = scalar_lea.vmem %s462_s10, 512 }
  0x17   : > { %v135_v3 = vadd.s32 8, %v134_v1  ;;  %v136_v4 = vmul.u32 2, %v134_v1  ;;  %v140_v5 = vmul.u32 2, %v139_v2  ;;  %v121_v8 = vld [vmem:[%s585_s22] sm:$0xff]  ;;  %230 = vrot.lane.b32.xlu1 %v588_v7, %s519_s23  ;;  %v129_v15 = vld [vmem:[%s585_s22 + $0x50] sm:$0xff]  ;;  %v275_v19 = vrot.slane %v123_v14, 1  ;;  %p464_p0 = scmp.lt.s32.totalorder %s743_s28, %s462_s10  ;;  %p465_p1 = scmp.lt.s32.totalorder %s463_s11, %s457_s4 }
  0x18   : > { %200 = vrot.lane.b32.xlu0 %v121_v8, %s519_s23  ;;  %v127_v13 = vld [vmem:[%s585_s22 + $0x40] sm:$0xff]  ;;  %v128_v18 = vld [vmem:[%s585_s22 + $0x48] sm:$0x1]  ;;  %v624_v20 = vadd.f32 %v123_v14, %v121_v8  ;;  %v278_v23 = vrot.slane %v129_v15, 1  ;;  %v124_v24 = vld [vmem:[%s585_s22 + $0x18] sm:$0x1]  ;;  %p460_p13 = pneg %p459_p12 }
  0x19   : > { %v137_v6 = vmul.u32 2, %v135_v3  ;;  %vm141_vm0 = vcmp.ge.s32.totalorder %v136_v4, 1  ;;  %vm143_vm1 = vcmp.lt.s32.totalorder %v136_v4, 17  ;;  %vm147_vm2 = vcmp.ge.s32.totalorder %v140_v5, 1  ;;  %v130_v25 = vld [vmem:[%s585_s22 + $0x58] sm:$0x1]  ;;  %p466_p2 = por %p465_p1, %p464_p0 }
  0x1a   : > { %v176_v9 = vadd.s32 1, %v136_v4  ;;  %vm602_vm5 = vmand %vm141_vm0, %vm143_vm1  ;;  %vm150_vm7 = vcmp.lt.s32.totalorder %v140_v5, 17  ;;  %v161_v16 = vadd.s32 1, %v140_v5  ;;  %v626_v21 = vadd.f32 %v129_v15, %v127_v13  ;;  %v125_v28 = vld [vmem:[%s585_s22 + $0x20] sm:$0xff]  ;;  %v132_v56 = vld [vmem:[%s585_s22 + $0x70] sm:$0xff] }
  0x1b   : > { %vm594_vm3 = vcmp.ge.s32.totalorder %v137_v6, 1  ;;  %vm598_vm4 = vcmp.lt.s32.totalorder %v137_v6, 17  ;;  %vm148_vm8 = vmand %vm602_vm5, %vm147_vm2  ;;  %v276_v29 = vrot.slane %v124_v24, 1  ;;  %v279_v30 = vrot.slane %v130_v25, 1  ;;  %v126_v57 = vld [vmem:[%s585_s22 + $0x30] sm:$0xff]  ;;  %p467_p3 = pnand %p466_p2, %p460_p13 }
  0x1c   : > { %vm146_vm6 = vmand %vm594_vm3, %vm598_vm4  ;;  %vm177_vm9 = vcmp.ge.s32.totalorder %v176_v9, 1  ;;  %vm178_vm11 = vcmp.lt.s32.totalorder %v176_v9, 17  ;;  %202 = vrot.lane.b32.xlu0 %v127_v13, %s519_s23  ;;  %v249_v32 = vrot.slane %v121_v8, 1  ;;  %v250_v33 = vrot.slane %v122_v17, 1 }
  0x1d   : > { %vm149_vm10 = vmand %vm146_vm6, %vm147_vm2  ;;  %v252_v34 = vrot.slane %v127_v13, 1  ;;  %vm162_vm0 = vcmp.ge.s32.totalorder %v161_v16, 1  ;;  %v253_v36 = vrot.slane %v128_v18, 1  ;;  %v662_v37 = vsel %vm248_vm14, %v275_v19, %v276_v29 }
  0x1e   : > { %vm630_vm12 = vmand %vm148_vm8, %vm150_vm7  ;;  %v665_v38 = vsel %vm248_vm14, %v278_v23, %v279_v30  ;;  %v251_v42 = vsel %vm248_vm14, %v249_v32, %v250_v33 }
  0x1f   : > { %vm637_vm13 = vmand %vm149_vm10, %vm150_vm7  ;;  %v643_v27 = vsel %vm630_vm12, %v121_v8, -inf  ;;  %v656_v35 = vsel %vm630_vm12, %v127_v13, -inf  ;;  %v254_v43 = vsel %vm248_vm14, %v252_v34, %v253_v36 }
  0x20   : > { %210 = vrot.lane.b32.xlu1 %v643_v27, %s519_s23  ;;  %vm650_vm15 = vmand %vm177_vm9, %vm178_vm11  ;;  %228 = vrot.lane.b32.xlu0 %v125_v28, %s519_s23  ;;  %vm165_vm9 = vcmp.lt.s32.totalorder %v161_v16, 17  ;;  %v158_v40 = vsel %vm637_vm13, %v122_v17, -inf  ;;  %v160_v44 = vsel %vm637_vm13, %v128_v18, -inf  ;;  %v261_v45 = vrot.slane %v643_v27, 1 }
  0x21   : > { %vm180_vm1 = vmand %vm650_vm15, %vm147_vm2  ;;  %v262_v46 = vrot.slane %v158_v40, 1  ;;  %v264_v54 = vrot.slane %v656_v35, 1  ;;  %v265_v55 = vrot.slane %v160_v44, 1 }
  0x22   : > { %vm181_vm8 = vmand %vm180_vm1, %vm150_vm7  ;;  %vm321_vm7 = vcmask 64512  }
  0x23   : > { %v184_v39 = vsel %vm181_vm8, %v125_v28, -inf  ;;  %vm163_vm2 = vmand %vm602_vm5, %vm162_vm0  ;;  %v683_v41 = vsel %vm181_vm8, %v588_v7, -inf  ;;  %v263_v1 = vsel %vm248_vm14, %v261_v45, %v262_v46  ;;  %v266_v4 = vsel %vm248_vm14, %v264_v54, %v265_v55 }
  0x24   : > { %212 = vrot.lane.b32.xlu1 %v656_v35, %s519_s23  ;;  %vm164_vm10 = vmand %vm146_vm6, %vm162_vm0  ;;  %238 = vrot.lane.b32.xlu0 %v184_v39, %s519_s23 }
  0x25   : > { %vm166_vm5 = vmand %vm163_vm2, %vm165_vm9 }
  0x26   : > { %vm693_vm3 = vmand %vm164_vm10, %vm165_vm9  ;;  %v172_v48 = vsel %vm166_vm5, %v123_v14, -inf  ;;  %v174_v49 = vsel %vm166_vm5, %v129_v15, -inf }
  0x27   : > { %v289_v50 = vrot.slane %v172_v48, 1  ;;  %v196_v51 = vmax.f32 %v643_v27, %v172_v48  ;;  %v197_v52 = vmax.f32 %v656_v35, %v174_v49  ;;  %v292_v53 = vrot.slane %v174_v49, 1  ;;  %vm186_vm4 = vmand %vm650_vm15, %vm162_vm0 }
  0x28   : > { %240 = vrot.lane.b32.xlu1 %v683_v41, %s519_s23  ;;  %vm708_vm6 = vmand %vm186_vm4, %vm165_vm9  ;;  %v175_v59 = vsel %vm693_vm3, %v130_v25, -inf  ;;  %v173_v60 = vsel %vm693_vm3, %v124_v24, -inf  ;;  %299 = vrot.lane.b32.xlu0 %v251_v42, %s519_s23 }
  0x29   : > { %v190_v61 = vsel %vm708_vm6, %v126_v57, -inf  ;;  %v191_v62 = vsel %vm708_vm6, %v132_v56, -inf  ;;  %v293_v63 = vrot.slane %v175_v59, 1  ;;  %v290_v0 = vrot.slane %v173_v60, 1 }
  0x2b   : > { %v294_v2 = vsel %vm248_vm14, %v292_v53, %v293_v63  ;;  %v291_v3 = vsel %vm248_vm14, %v289_v50, %v290_v0 }
  0x2c   : > { %301 = vrot.lane.b32.xlu1 %v254_v43, %s519_s23  ;;  %307 = vrot.lane.b32.xlu0 %v263_v1, %s519_s23 }
  0x30   : > { %309 = vrot.lane.b32.xlu1 %v266_v4, %s519_s23 }
  0x89   : > { %v231_v5 = vpop.permute.xlu1 %230 }
  0x8a   : > { %v201_v6 = vpop.permute.xlu0 %200 }
  0x8b   : > { %v206_v8 = vadd.f32 %v201_v6, %v624_v20 }
  0x8d   : > { %v218_v9 = vadd.f32 %v206_v8, %v125_v28 }
  0x8e   : > { %v203_v10 = vpop.permute.xlu0 %202 }
  0x8f   : > { %v207_v11 = vadd.f32 %v203_v10, %v626_v21  ;;  %v222_v12 = vadd.f32 %v218_v9, %v126_v57 }
  0x91   : > { %v219_v14 = vadd.f32 %v207_v11, %v588_v7 }
  0x92   : > { %v211_v13 = vpop.permute.xlu1 %210  ;;  %v229_v16 = vpop.permute.xlu0 %228 }
  0x93   : > { %v216_v15 = vmax.f32 %v196_v51, %v211_v13  ;;  %v223_v17 = vadd.f32 %v219_v14, %v132_v56  ;;  %v234_v19 = vadd.f32 %v229_v16, %v222_v12 }
  0x95   : > { %v220_v18 = vmax.f32 %v216_v15, %v184_v39  ;;  %v257_v23 = vadd.f32 %v251_v42, %v234_v19  ;;  %v235_v20 = vadd.f32 %v231_v5, %v223_v17 }
  0x96   : > { %v213_v22 = vpop.permute.xlu1 %212  ;;  %v239_v26 = vpop.permute.xlu0 %238 }
  0x97   : > { %v217_v24 = vmax.f32 %v197_v52, %v213_v22  ;;  %v224_v25 = vmax.f32 %v220_v18, %v190_v61  ;;  %v283_v28 = vadd.f32 %v662_v37, %v257_v23  ;;  %v258_v29 = vadd.f32 %v254_v43, %v235_v20 }
  0x99   : > { %v221_v27 = vmax.f32 %v217_v24, %v683_v41  ;;  %v244_v21 = vmax.f32 %v224_v25, %v239_v26  ;;  %v284_v32 = vadd.f32 %v665_v38, %v258_v29 }
  0x9a   : > { %v241_v7 = vpop.permute.xlu1 %240  ;;  %v300_v33 = vpop.permute.xlu0 %299 }
  0x9b   : > { %v269_v30 = vmax.f32 %v244_v21, %v263_v1  ;;  %v225_v31 = vmax.f32 %v221_v27, %v191_v62  ;;  %v305_v40 = vadd.f32 %v300_v33, %v283_v28 }
  0x9d   : > { %v245_v34 = vmax.f32 %v225_v31, %v241_v7  ;;  %v297_v35 = vmax.f32 %v269_v30, %v291_v3  ;;  %v315_v45 = vmul.f32 0.11111111, %v305_v40 }
  0x9e   : > { %v302_v36 = vpop.permute.xlu1 %301  ;;  %v308_v41 = vpop.permute.xlu0 %307 }
  0x9f   : > { %v270_v39 = vmax.f32 %v245_v34, %v266_v4  ;;  %v306_v42 = vadd.f32 %v302_v36, %v284_v32  ;;  %v313_v37 = vmax.f32 %v297_v35, %v308_v41 }
  0xa1   : > { %v298_v44 = vmax.f32 %v270_v39, %v294_v2  ;;  %v317_v47 = vmul.f32 2.0, %v313_v37  ;;  %v316_v38 = vmul.f32 0.11111111, %v306_v42 }
  0xa2   : > { %v310_v43 = vpop.permute.xlu1 %309 }
  0xa3   : > { %v314_v46 = vmax.f32 %v298_v44, %v310_v43  ;;  %v319_v49 = vsub.f32 %v315_v45, %v317_v47 }
  0xa5   : > { %v318_v48 = vmul.f32 2.0, %v314_v46  ;;  %322 = vst.msk [vmem:[%s112_s27] sm:$0xff] %vm321_vm7, %v319_v49 }
  0xa7   : > { %v320_v50 = vsub.f32 %v316_v38, %v318_v48 }
  0xa9   : > { %323 = vst.msk [vmem:[%s112_s27 + $0x8] sm:$0xff] %vm321_vm7, %v320_v50 }
  0xaa   : > { %470 = shalt.err (!%p467_p3)
}
  0xab   : > { %s471_s13 = scalar_lea.hbm %s741_s2, 256  ;;  %s475_s19 = scalar_lea.hbm %s788_s1, 1024 }
  0xac   : > { %p472_p4 = scmp.ne.s32.totalorder %s741_s2, %s471_s13  ;;  %p476_p9 = scmp.lt.s32.totalorder %s741_s2, %s788_s1 }
  0xad   : > { %p477_p10 = scmp.lt.s32.totalorder %s475_s19, %s471_s13 }
  0xae   : > { %p473_p7 = pnand %p472_p4, %p571_p5 }
  0xaf   : > { %p478_p11 = por %p477_p10, %p476_p9 }
  0xb0   : > { %p474_p8 = pneg %p473_p7 }
  0xb2   : > { %p479_p12 = pnand %p478_p11, %p474_p8 }
  0xb4   : > { %482 = shalt.err (!%p479_p12)
}
  0xb5   : > { %s521_s22 = smov 128   ;;  %s522_s23 = smov 8  }
  0xb6   : > { %415 = dma.vmem_to_hbm [thread:$0]  (%p571_p5), %s743_s28, 256, %s741_s2, %s747_s3, %s521_s22, %s521_s22, %s522_s23  }
  0xb7 PF: > { %p421_p13 = scmp.ge.s32.totalorder %s517_s9, 2  ;;  %s353_s24 = sand.u32 1, %s505_s6  }
  0xb8   : > { %s354_s25 = scalar_lea.sflag [#allocation3], %s353_s24 }
  0xb9   : > { %p418_p0 = pnand %p421_p13, %p575_p6 }
  0xbb   : > { %p419_p1 = pneg %p418_p0 }
  0xbd   : > { %500 = dma.done.wait (%p419_p1), %s354_s25, 256  }
  0xbe   : > { %502 = vsyncadd (%p419_p1), %s354_s25, 4294967040  ;;  %p11_p2 = scmp.ge.s32.totalorder %s558_s12, 6   ;;  %s807_s6 = smov %s509_s7 }
  0xbf   : > { %s808_s7 = smov %s513_s8  ;;  %s809_s8 = smov %s569_s15 }
  0xc0   : > { %s810_s9 = smov %s558_s12  ;;  %13 = sbr.rel (!%p11_p2) target bundleno = 3 (0x3), region = 59 }
  0xc5   :  { %359 = vsyncpa [#allocation3], 1 }
  0xc6   :  { %361 = vsyncpa [#allocation3 + $0x1], 1 }

</bundles_post_ra>
